<compile_context>
chip_gen: v6e
topology: v6e:2x2x1
jax: 0.10.0
libtpu: 0.0.40
codegen_flags: <defaults>
</compile_context>

<pallas_src>
import jax
import jax.numpy as jnp
from jax import lax
from jax.experimental import pallas as pl
from jax.experimental.pallas import tpu as pltpu


OUT_W = 16        # lane-packed output slab width (10 meaningful lanes)
ROW_ALIGN = 16    # batch-tile row alignment (sublane-safe for f32 and bf16)

# Output lane layout of the packed head matmul:
#   0: synergy_out_1   1: bliss_out   2: zip_out   3: hsa_out
#   4,5: synergy_out_2      (stored as logit differences -> sigmoid == softmax2)
#   6: sensitivity_out_1    7: ic50
#   8,9: sensitivity_out_2  (logit differences)
#   10..15: zero padding


# ----------------------------------------------------------------------------
# Pallas kernel: one batch tile per grid step.
# ----------------------------------------------------------------------------
def mtl_synergy2_kernel(
    d1_ref, d2_ref, c_ref,                 # (TB, drug), (TB, drug), (TB, cell)
    w1d_ref, w1c_ref, b1_ref,              # BN-folded Linear(input, h0), split
    w2_ref, b2_ref,                        # Linear(h0, h1)
    wa_ref, wb_ref, bab_ref,               # fused syn-layer-1 + sen-layer-1
    w2bd_ref, b2bd_ref,                    # blockdiag(syn-layer-2, sen-layer-2)
    whead_ref, bhead_ref,                  # packed heads (softmax folded as diffs)
    out_ref,                               # (TB, OUT_W)
):
    f32 = jnp.float32
    d1 = d1_ref[...].astype(f32)
    d2 = d2_ref[...].astype(f32)
    c = c_ref[...].astype(f32)

    # Shared drug_cell_line tower.  cat(d, c) @ W1 is split so the cell-line
    # projection is computed once and reused for both drugs.
    c_proj = jnp.dot(c, w1c_ref[...], preferred_element_type=f32) + b1_ref[...]
    w1d = w1d_ref[...]
    h_1 = jnp.maximum(jnp.dot(d1, w1d, preferred_element_type=f32) + c_proj, 0.0)
    h_2 = jnp.maximum(jnp.dot(d2, w1d, preferred_element_type=f32) + c_proj, 0.0)

    w2 = w2_ref[...]
    b2 = b2_ref[...]
    d1_c = jnp.maximum(jnp.dot(h_1, w2, preferred_element_type=f32) + b2, 0.0)
    d2_c = jnp.maximum(jnp.dot(h_2, w2, preferred_element_type=f32) + b2, 0.0)

    # Fused synergy-layer-1 + sensitivity-layer-1 (wb is zero-padded on the
    # sensitivity columns so d2_c's contribution adds with no lane slicing).
    u = jnp.maximum(
        jnp.dot(d1_c, wa_ref[...], preferred_element_type=f32)
        + jnp.dot(d2_c, wb_ref[...], preferred_element_type=f32)
        + bab_ref[...], 0.0)                                   # (TB, h2+h3)

    # Block-diagonal fusion of synergy-layer-2 and sensitivity-layer-2.
    ss = jnp.maximum(jnp.dot(u, w2bd_ref[...], preferred_element_type=f32)
                     + b2bd_ref[...], 0.0)                     # (TB, 192)

    # All eight heads in one matmul; the two 2-way softmaxes are represented as
    # logit-difference columns so softmax == sigmoid(head) at those lanes.
    heads = (jnp.dot(ss, whead_ref[...], preferred_element_type=f32)
             + bhead_ref[...])                                 # (TB, OUT_W)

    lane = lax.broadcasted_iota(jnp.int32, heads.shape, 1)
    is_sm = (lane == 4) | (lane == 5) | (lane == 8) | (lane == 9)
    denom = 1.0 + jnp.exp(-heads)                # EUP exp (all lanes, trivial)
    r = pl.reciprocal(denom, approx=True)        # EUP reciprocal
    r = r * (2.0 - denom * r)                    # one Newton step -> f32 accuracy
    out_ref[...] = jnp.where(is_sm, r, heads)    # single full-width store


# ----------------------------------------------------------------------------
# Parameter prep: fold BN, split/fuse/pack weights (one-time, plain XLA).
# ----------------------------------------------------------------------------
def pack_params_for_kernel(p, drug_dim, hidden, eps=1e-5):
    h0, h1, h2, h3 = hidden
    f32 = jnp.float32

    # Fold inference-mode BatchNorm into the first Linear, then split drug/cell.
    bn_scale = p["gamma"] / jnp.sqrt(p["running_var"] + eps)
    bn_shift = p["beta"] - p["running_mean"] * bn_scale
    w1f = p["w1"] * bn_scale[None, :]
    b1f = (p["b1"] * bn_scale + bn_shift)[None, :]
    w1d = w1f[:drug_dim]                       # (drug_dim, h0)
    w1c = w1f[drug_dim:]                       # (cell_dim, h0)

    w2 = p["w2"]
    b2 = p["b2"][None, :]

    # Fused first layers of synergy (split-concat) + sensitivity branches.
    wa = jnp.concatenate([p["wsyn1"][:h1], p["wsen1"]], axis=1)       # (h1, h2+h3)
    wb = jnp.concatenate([p["wsyn1"][h1:], jnp.zeros((h1, h3), f32)], axis=1)
    bab = jnp.concatenate([p["bsyn1"], p["bsen1"]])[None, :]

    # Block-diagonal second layers: [t | s] @ blockdiag(wsyn2, wsen2).
    w2bd = jnp.zeros((h2 + h3, 128 + 64), f32)
    w2bd = w2bd.at[:h2, :128].set(p["wsyn2"])
    w2bd = w2bd.at[h2:, 128:].set(p["wsen2"])
    b2bd = jnp.concatenate([p["bsyn2"], p["bsen2"]])[None, :]

    # Packed heads -> lane-dense (192, OUT_W) weight.  The softmax heads are
    # stored as logit DIFFERENCES so the kernel only needs a sigmoid.
    whead = jnp.zeros((128 + 64, OUT_W), f32)
    whead = whead.at[:128, 0].set(p["w_syn_out_1"][:, 0])
    whead = whead.at[:128, 1].set(p["w_bliss"][:, 0])
    whead = whead.at[:128, 2].set(p["w_zip"][:, 0])
    whead = whead.at[:128, 3].set(p["w_hsa"][:, 0])
    whead = whead.at[:128, 4].set(p["w_syn_out_2"][:, 0] - p["w_syn_out_2"][:, 1])
    whead = whead.at[:128, 5].set(p["w_syn_out_2"][:, 1] - p["w_syn_out_2"][:, 0])
    whead = whead.at[128:, 6].set(p["w_sen_out_1"][:, 0])
    whead = whead.at[128:, 7].set(p["w_ic50"][:, 0])
    whead = whead.at[128:, 8].set(p["w_sen_out_2"][:, 0] - p["w_sen_out_2"][:, 1])
    whead = whead.at[128:, 9].set(p["w_sen_out_2"][:, 1] - p["w_sen_out_2"][:, 0])

    bhead = jnp.zeros((OUT_W,), f32)
    bhead = bhead.at[0].set(p["b_syn_out_1"][0])
    bhead = bhead.at[1].set(p["b_bliss"][0])
    bhead = bhead.at[2].set(p["b_zip"][0])
    bhead = bhead.at[3].set(p["b_hsa"][0])
    bhead = bhead.at[4].set(p["b_syn_out_2"][0] - p["b_syn_out_2"][1])
    bhead = bhead.at[5].set(p["b_syn_out_2"][1] - p["b_syn_out_2"][0])
    bhead = bhead.at[6].set(p["b_sen_out_1"][0])
    bhead = bhead.at[7].set(p["b_ic50"][0])
    bhead = bhead.at[8].set(p["b_sen_out_2"][0] - p["b_sen_out_2"][1])
    bhead = bhead.at[9].set(p["b_sen_out_2"][1] - p["b_sen_out_2"][0])
    bhead = bhead[None, :]

    return (w1d, w1c, b1f, w2, b2, wa, wb, bab, w2bd, b2bd, whead, bhead)


# ----------------------------------------------------------------------------
# Wrapper glue: tiling policy, padding, pallas_call, output unpacking.
# ----------------------------------------------------------------------------
def _round_up(n, m):
    return ((n + m - 1) // m) * m


def _cdiv(a, b):
    return (a + b - 1) // b


def _choose_tiling(batch, max_batch_tile):
    b_al = _round_up(max(batch, 1), ROW_ALIGN)
    tb_cap = max(ROW_ALIGN, min(int(max_batch_tile), b_al))
    nb = _cdiv(b_al, tb_cap)
    if nb < 2 and b_al >= 2 * ROW_ALIGN:
        # Keep >=2 tiles so dimension_semantics=("parallel",) shards the batch
        # across both v7x TensorCores; one extra ~0.35us grid step on v5e/v6e.
        nb = 2
    tb = _round_up(_cdiv(b_al, nb), ROW_ALIGN)
    bp = nb * tb
    return tb, nb, bp


def _vmem_limit_bytes(tb, drug_dim, cell_dim, h0, h1, h23, weights, in_itemsize):
    per_row_in = (2 * drug_dim + cell_dim) * in_itemsize
    per_row_tmp = (3 * h0 + 2 * h1 + h23 + 192 + 4 * OUT_W) * 4
    per_row_out = OUT_W * 4
    tile_bytes = tb * (2 * per_row_in + per_row_tmp + 2 * per_row_out)  # dbl-buffered I/O
    w_bytes = 2 * sum(int(w.size) * w.dtype.itemsize for w in weights)  # dbl-buffered weights
    est = 2 * (tile_bytes + w_bytes)            # ~2x headroom for compiler scratch
    return int(min(max(est, 8 << 20), 64 << 20))


def mtl_synergy2_forward(d1, d2, c_exp, packed_params, *,
                         max_batch_tile=2048, use_bf16_inputs=False):
    B, drug_dim = d1.shape
    cell_dim = c_exp.shape[1]
    in_dtype = jnp.bfloat16 if use_bf16_inputs else jnp.float32

    tb, nb, bp = _choose_tiling(B, max_batch_tile)

    def prep(x):
        x = x.astype(in_dtype)
        if bp != B:
            x = jnp.pad(x, ((0, bp - B), (0, 0)))
        return x

    d1p, d2p, cp = prep(d1), prep(d2), prep(c_exp)

    weights = packed_params
    act_specs = [
        pl.BlockSpec((tb, drug_dim), lambda i: (i, 0)),
        pl.BlockSpec((tb, drug_dim), lambda i: (i, 0)),
        pl.BlockSpec((tb, cell_dim), lambda i: (i, 0)),
    ]
    weight_specs = [pl.BlockSpec(w.shape, lambda i: (0, 0)) for w in weights]

    grid_spec = pltpu.PrefetchScalarGridSpec(
        num_scalar_prefetch=0,
        grid=(nb,),
        in_specs=act_specs + weight_specs,
        out_specs=pl.BlockSpec((tb, OUT_W), lambda i: (i, 0)),
    )

    h0 = weights[0].shape[1]          # w1d: (drug_dim, h0)
    h1 = weights[3].shape[1]          # w2:  (h0, h1)
    h23 = weights[5].shape[1]         # wa:  (h1, h2 + h3)
    in_itemsize = jnp.dtype(in_dtype).itemsize

    vmem_limit = _vmem_limit_bytes(tb, drug_dim, cell_dim, h0, h1, h23,
                                   weights, in_itemsize)

    flops_per_row = 2 * (cell_dim * h0 + 2 * drug_dim * h0 + 2 * h0 * h1
                         + 2 * h1 * h23 + h23 * 192 + 192 * OUT_W)
    cost = pl.CostEstimate(
        flops=int(bp) * int(flops_per_row),
        transcendentals=int(bp) * 2 * OUT_W,
        bytes_accessed=int(bp) * ((2 * drug_dim + cell_dim) * in_itemsize
                                  + OUT_W * 4)
        + sum(int(w.size) * w.dtype.itemsize for w in weights),
    )

    out = pl.pallas_call(
        mtl_synergy2_kernel,
        out_shape=jax.ShapeDtypeStruct((bp, OUT_W), jnp.float32),
        grid_spec=grid_spec,
        compiler_params=pltpu.CompilerParams(
            dimension_semantics=("parallel",),
            vmem_limit_bytes=vmem_limit,
        ),
        cost_estimate=cost,
    )(d1p, d2p, cp, *weights)

    out = out[:B]
    # Matches the PyTorch return tuple:
    # (syn_out_1, d1_sen_out_1, syn_out_2, d1_sen_out_2, bliss, zip, hsa, ic50)
    return (
        out[:, 0],
        out[:, 6],
        out[:, 4:6],
        out[:, 8:10],
        out[:, 1],
        out[:, 2],
        out[:, 3],
        out[:, 7],
    )


# ----------------------------------------------------------------------------
# Deterministic raw parameters (PyTorch layout, weights pre-transposed (in,out)).
# ----------------------------------------------------------------------------
def init_params(key, drug_dim, cell_dim, hidden):
    h0, h1, h2, h3 = hidden
    input_dim = drug_dim + cell_dim

    def lin(k, din, dout, scale=0.05):
        kw, kb = jax.random.split(k)
        return (scale * jax.random.normal(kw, (din, dout), jnp.float32),
                scale * jax.random.normal(kb, (dout,), jnp.float32))

    ks = jax.random.split(key, 16)
    p = {}
    p["w1"], p["b1"] = lin(ks[0], input_dim, h0)
    p["w2"], p["b2"] = lin(ks[1], h0, h1)
    p["wsyn1"], p["bsyn1"] = lin(ks[2], 2 * h1, h2)
    p["wsyn2"], p["bsyn2"] = lin(ks[3], h2, 128)
    p["wsen1"], p["bsen1"] = lin(ks[4], h1, h3)
    p["wsen2"], p["bsen2"] = lin(ks[5], h3, 64)
    p["w_syn_out_1"], p["b_syn_out_1"] = lin(ks[6], 128, 1)
    p["w_syn_out_2"], p["b_syn_out_2"] = lin(ks[7], 128, 2)
    p["w_bliss"], p["b_bliss"] = lin(ks[8], 128, 1)
    p["w_zip"], p["b_zip"] = lin(ks[9], 128, 1)
    p["w_hsa"], p["b_hsa"] = lin(ks[10], 128, 1)
    p["w_sen_out_1"], p["b_sen_out_1"] = lin(ks[11], 64, 1)
    p["w_sen_out_2"], p["b_sen_out_2"] = lin(ks[12], 64, 2)
    p["w_ic50"], p["b_ic50"] = lin(ks[13], 64, 1)
    # BatchNorm1d(h0), inference mode, non-trivial running statistics.
    p["gamma"] = 1.0 + 0.05 * jax.random.normal(ks[14], (h0,), jnp.float32)
    p["beta"] = 0.05 * jax.random.normal(ks[15], (h0,), jnp.float32)
    p["running_mean"] = 0.1 * jax.random.normal(jax.random.fold_in(key, 101),
                                                (h0,), jnp.float32)
    p["running_var"] = 1.0 + 0.2 * jax.random.uniform(jax.random.fold_in(key, 102),
                                                      (h0,), jnp.float32)
    return p


# ----------------------------------------------------------------------------
# Pure-JAX reference mirroring the PyTorch forward (eval mode, Dropout = id).
# ----------------------------------------------------------------------------
def reference_forward(d1, d2, c, p, eps=1e-5):
    def bn(x):
        return ((x - p["running_mean"]) / jnp.sqrt(p["running_var"] + eps)
                * p["gamma"] + p["beta"])

    def dcl(d):
        x = jnp.concatenate([d, c], axis=1)
        h = jnp.maximum(bn(x @ p["w1"] + p["b1"]), 0.0)
        return jnp.maximum(h @ p["w2"] + p["b2"], 0.0)

    d1_c, d2_c = dcl(d1), dcl(d2)
    s = jnp.maximum(d1_c @ p["wsen1"] + p["bsen1"], 0.0)
    d1_sen = jnp.maximum(s @ p["wsen2"] + p["bsen2"], 0.0)
    t = jnp.maximum(jnp.concatenate([d1_c, d2_c], axis=1) @ p["wsyn1"]
                    + p["bsyn1"], 0.0)
    syn = jnp.maximum(t @ p["wsyn2"] + p["bsyn2"], 0.0)

    syn_out_1 = (syn @ p["w_syn_out_1"] + p["b_syn_out_1"])[:, 0]
    syn_out_2 = jax.nn.softmax(syn @ p["w_syn_out_2"] + p["b_syn_out_2"], axis=1)
    bliss = (syn @ p["w_bliss"] + p["b_bliss"])[:, 0]
    zipo = (syn @ p["w_zip"] + p["b_zip"])[:, 0]
    hsa = (syn @ p["w_hsa"] + p["b_hsa"])[:, 0]
    sen_out_1 = (d1_sen @ p["w_sen_out_1"] + p["b_sen_out_1"])[:, 0]
    sen_out_2 = jax.nn.softmax(d1_sen @ p["w_sen_out_2"] + p["b_sen_out_2"], axis=1)
    ic50 = (d1_sen @ p["w_ic50"] + p["b_ic50"])[:, 0]
    return (syn_out_1, sen_out_1, syn_out_2, sen_out_2, bliss, zipo, hsa, ic50)


if __name__ == "__main__":
    DRUG_DIM, CELL_DIM = 32, 32
    HIDDEN = (64, 32, 64, 32)    # hidden_neurons[0..3]

    key = jax.random.PRNGKey(0)
    k_p, k_data = jax.random.split(key)
    raw = init_params(k_p, DRUG_DIM, CELL_DIM, HIDDEN)
    packed = pack_params_for_kernel(raw, DRUG_DIM, HIDDEN)

    # Tolerance: BN folding, fused/packed weights, the sigmoid-form softmax and
    # the EUP reciprocal (+1 Newton step) shift results by a few ULPs only.
    ATOL = RTOL = 1e-4

    def run(batch, max_tile, use_bf16=False):
        kd1, kd2, kc = jax.random.split(jax.random.fold_in(k_data, batch), 3)
        d1 = jax.random.normal(kd1, (batch, DRUG_DIM), jnp.float32)
        d2 = jax.random.normal(kd2, (batch, DRUG_DIM), jnp.float32)
        c = jax.random.normal(kc, (batch, CELL_DIM), jnp.float32)
        outs = jax.block_until_ready(
            mtl_synergy2_forward(d1, d2, c, packed,
                                 max_batch_tile=max_tile,
                                 use_bf16_inputs=use_bf16))
        return (d1, d2, c), outs

    def check(batch, max_tile):
        (d1, d2, c), outs = run(batch, max_tile)
        refs = reference_forward(d1, d2, c, raw)
        for o, r in zip(outs, refs):
            assert o.shape == r.shape, (o.shape, r.shape)
            assert jnp.allclose(o, r, atol=ATOL, rtol=RTOL), \
                float(jnp.max(jnp.abs(o - r)))

    check(batch=8, max_tile=2048)     # single-tile path (+ row padding)
    check(batch=37, max_tile=16)      # multi-tile grid + batch padding path
    check(batch=64, max_tile=2048)    # forced nb>=2 (v7x megacore) path

    # bf16-activation path (halves input HBM read): smoke test only, since
    # quantized inputs diverge from the f32 reference beyond 1e-4.
    _, outs_bf16 = run(batch=64, max_tile=2048, use_bf16=True)
    for o in outs_bf16:
        assert bool(jnp.all(jnp.isfinite(o)))

    print("KERNEL_OK")
</pallas_src>

<mosaic_0001>
module attributes {stable_mosaic.version = 11 : i64} {
  func.func @mtl_synergy2_kernel(%arg0: i32, %arg1: memref<16x32xf32, #tpu.memory_space<vmem>>, %arg2: memref<16x32xf32, #tpu.memory_space<vmem>>, %arg3: memref<16x32xf32, #tpu.memory_space<vmem>>, %arg4: memref<32x64xf32, #tpu.memory_space<vmem>>, %arg5: memref<32x64xf32, #tpu.memory_space<vmem>>, %arg6: memref<1x64xf32, #tpu.memory_space<vmem>>, %arg7: memref<64x32xf32, #tpu.memory_space<vmem>>, %arg8: memref<1x32xf32, #tpu.memory_space<vmem>>, %arg9: memref<32x96xf32, #tpu.memory_space<vmem>>, %arg10: memref<32x96xf32, #tpu.memory_space<vmem>>, %arg11: memref<1x96xf32, #tpu.memory_space<vmem>>, %arg12: memref<96x192xf32, #tpu.memory_space<vmem>>, %arg13: memref<1x192xf32, #tpu.memory_space<vmem>>, %arg14: memref<192x16xf32, #tpu.memory_space<vmem>>, %arg15: memref<1x16xf32, #tpu.memory_space<vmem>>, %arg16: memref<16x16xf32, #tpu.memory_space<vmem>>) attributes {dimension_semantics = [#tpu.dimension_semantics<parallel>], iteration_bounds = array<i64: 1>, scalar_prefetch = 0 : i64, scratch_operands = 0 : i64, tpu.core_type = #tpu.core_type<tc>, window_params = [{transform_indices = @transform_0, window_bounds = array<i64: 16, 32>}, {transform_indices = @transform_1, window_bounds = array<i64: 16, 32>}, {transform_indices = @transform_2, window_bounds = array<i64: 16, 32>}, {pipeline_mode = #tpu.pipeline_mode<synchronous>, transform_indices = @transform_3, window_bounds = array<i64: 32, 64>}, {pipeline_mode = #tpu.pipeline_mode<synchronous>, transform_indices = @transform_4, window_bounds = array<i64: 32, 64>}, {pipeline_mode = #tpu.pipeline_mode<synchronous>, transform_indices = @transform_5, window_bounds = array<i64: 1, 64>}, {pipeline_mode = #tpu.pipeline_mode<synchronous>, transform_indices = @transform_6, window_bounds = array<i64: 64, 32>}, {pipeline_mode = #tpu.pipeline_mode<synchronous>, transform_indices = @transform_7, window_bounds = array<i64: 1, 32>}, {pipeline_mode = #tpu.pipeline_mode<synchronous>, transform_indices = @transform_8, window_bounds = array<i64: 32, 96>}, {pipeline_mode = #tpu.pipeline_mode<synchronous>, transform_indices = @transform_9, window_bounds = array<i64: 32, 96>}, {pipeline_mode = #tpu.pipeline_mode<synchronous>, transform_indices = @transform_10, window_bounds = array<i64: 1, 96>}, {pipeline_mode = #tpu.pipeline_mode<synchronous>, transform_indices = @transform_11, window_bounds = array<i64: 96, 192>}, {pipeline_mode = #tpu.pipeline_mode<synchronous>, transform_indices = @transform_12, window_bounds = array<i64: 1, 192>}, {pipeline_mode = #tpu.pipeline_mode<synchronous>, transform_indices = @transform_13, window_bounds = array<i64: 192, 16>}, {pipeline_mode = #tpu.pipeline_mode<synchronous>, transform_indices = @transform_14, window_bounds = array<i64: 1, 16>}, {transform_indices = @transform_15, window_bounds = array<i64: 16, 16>}]} {
    %c0 = arith.constant 0 : index
    %c0_0 = arith.constant 0 : index
    %0 = vector.load %arg1[%c0, %c0_0] : memref<16x32xf32, #tpu.memory_space<vmem>>, vector<16x32xf32>
    %c0_1 = arith.constant 0 : index
    %c0_2 = arith.constant 0 : index
    %1 = vector.load %arg2[%c0_1, %c0_2] : memref<16x32xf32, #tpu.memory_space<vmem>>, vector<16x32xf32>
    %c0_3 = arith.constant 0 : index
    %c0_4 = arith.constant 0 : index
    %2 = vector.load %arg3[%c0_3, %c0_4] : memref<16x32xf32, #tpu.memory_space<vmem>>, vector<16x32xf32>
    %c0_5 = arith.constant 0 : index
    %c0_6 = arith.constant 0 : index
    %3 = vector.load %arg5[%c0_5, %c0_6] : memref<32x64xf32, #tpu.memory_space<vmem>>, vector<32x64xf32>
    %cst = arith.constant dense<0.000000e+00> : vector<16x64xf32>
    %4 = tpu.matmul %2, %3, %cst {dimension_numbers = #tpu.dot_dimension_numbers<[1], [0], [0], [1], [0, 0, 1, 1], [], []>} : vector<16x32xf32>, vector<32x64xf32>, vector<16x64xf32> -> vector<16x64xf32>
    %c0_7 = arith.constant 0 : index
    %c0_8 = arith.constant 0 : index
    %5 = vector.load %arg6[%c0_7, %c0_8] : memref<1x64xf32, #tpu.memory_space<vmem>>, vector<1x64xf32>
    %6 = vector.broadcast %5 : vector<1x64xf32> to vector<16x64xf32>
    %7 = arith.addf %4, %6 : vector<16x64xf32>
    %c0_9 = arith.constant 0 : index
    %c0_10 = arith.constant 0 : index
    %8 = vector.load %arg4[%c0_9, %c0_10] : memref<32x64xf32, #tpu.memory_space<vmem>>, vector<32x64xf32>
    %cst_11 = arith.constant dense<0.000000e+00> : vector<16x64xf32>
    %9 = tpu.matmul %0, %8, %cst_11 {dimension_numbers = #tpu.dot_dimension_numbers<[1], [0], [0], [1], [0, 0, 1, 1], [], []>} : vector<16x32xf32>, vector<32x64xf32>, vector<16x64xf32> -> vector<16x64xf32>
    %10 = arith.addf %9, %7 : vector<16x64xf32>
    %cst_12 = arith.constant 0.000000e+00 : f32
    %11 = vector.broadcast %cst_12 : f32 to vector<16x64xf32>
    %12 = arith.maximumf %10, %11 : vector<16x64xf32>
    %cst_13 = arith.constant dense<0.000000e+00> : vector<16x64xf32>
    %13 = tpu.matmul %1, %8, %cst_13 {dimension_numbers = #tpu.dot_dimension_numbers<[1], [0], [0], [1], [0, 0, 1, 1], [], []>} : vector<16x32xf32>, vector<32x64xf32>, vector<16x64xf32> -> vector<16x64xf32>
    %14 = arith.addf %13, %7 : vector<16x64xf32>
    %cst_14 = arith.constant 0.000000e+00 : f32
    %15 = vector.broadcast %cst_14 : f32 to vector<16x64xf32>
    %16 = arith.maximumf %14, %15 : vector<16x64xf32>
    %c0_15 = arith.constant 0 : index
    %c0_16 = arith.constant 0 : index
    %17 = vector.load %arg7[%c0_15, %c0_16] : memref<64x32xf32, #tpu.memory_space<vmem>>, vector<64x32xf32>
    %c0_17 = arith.constant 0 : index
    %c0_18 = arith.constant 0 : index
    %18 = vector.load %arg8[%c0_17, %c0_18] : memref<1x32xf32, #tpu.memory_space<vmem>>, vector<1x32xf32>
    %cst_19 = arith.constant dense<0.000000e+00> : vector<16x32xf32>
    %19 = tpu.matmul %12, %17, %cst_19 {dimension_numbers = #tpu.dot_dimension_numbers<[1], [0], [0], [1], [0, 0, 1, 1], [], []>} : vector<16x64xf32>, vector<64x32xf32>, vector<16x32xf32> -> vector<16x32xf32>
    %20 = vector.broadcast %18 : vector<1x32xf32> to vector<16x32xf32>
    %21 = arith.addf %19, %20 : vector<16x32xf32>
    %cst_20 = arith.constant 0.000000e+00 : f32
    %22 = vector.broadcast %cst_20 : f32 to vector<16x32xf32>
    %23 = arith.maximumf %21, %22 : vector<16x32xf32>
    %cst_21 = arith.constant dense<0.000000e+00> : vector<16x32xf32>
    %24 = tpu.matmul %16, %17, %cst_21 {dimension_numbers = #tpu.dot_dimension_numbers<[1], [0], [0], [1], [0, 0, 1, 1], [], []>} : vector<16x64xf32>, vector<64x32xf32>, vector<16x32xf32> -> vector<16x32xf32>
    %25 = vector.broadcast %18 : vector<1x32xf32> to vector<16x32xf32>
    %26 = arith.addf %24, %25 : vector<16x32xf32>
    %cst_22 = arith.constant 0.000000e+00 : f32
    %27 = vector.broadcast %cst_22 : f32 to vector<16x32xf32>
    %28 = arith.maximumf %26, %27 : vector<16x32xf32>
    %c0_23 = arith.constant 0 : index
    %c0_24 = arith.constant 0 : index
    %29 = vector.load %arg9[%c0_23, %c0_24] : memref<32x96xf32, #tpu.memory_space<vmem>>, vector<32x96xf32>
    %cst_25 = arith.constant dense<0.000000e+00> : vector<16x96xf32>
    %30 = tpu.matmul %23, %29, %cst_25 {dimension_numbers = #tpu.dot_dimension_numbers<[1], [0], [0], [1], [0, 0, 1, 1], [], []>} : vector<16x32xf32>, vector<32x96xf32>, vector<16x96xf32> -> vector<16x96xf32>
    %c0_26 = arith.constant 0 : index
    %c0_27 = arith.constant 0 : index
    %31 = vector.load %arg10[%c0_26, %c0_27] : memref<32x96xf32, #tpu.memory_space<vmem>>, vector<32x96xf32>
    %cst_28 = arith.constant dense<0.000000e+00> : vector<16x96xf32>
    %32 = tpu.matmul %28, %31, %cst_28 {dimension_numbers = #tpu.dot_dimension_numbers<[1], [0], [0], [1], [0, 0, 1, 1], [], []>} : vector<16x32xf32>, vector<32x96xf32>, vector<16x96xf32> -> vector<16x96xf32>
    %33 = arith.addf %30, %32 : vector<16x96xf32>
    %c0_29 = arith.constant 0 : index
    %c0_30 = arith.constant 0 : index
    %34 = vector.load %arg11[%c0_29, %c0_30] : memref<1x96xf32, #tpu.memory_space<vmem>>, vector<1x96xf32>
    %35 = vector.broadcast %34 : vector<1x96xf32> to vector<16x96xf32>
    %36 = arith.addf %33, %35 : vector<16x96xf32>
    %cst_31 = arith.constant 0.000000e+00 : f32
    %37 = vector.broadcast %cst_31 : f32 to vector<16x96xf32>
    %38 = arith.maximumf %36, %37 : vector<16x96xf32>
    %c0_32 = arith.constant 0 : index
    %c0_33 = arith.constant 0 : index
    %39 = vector.load %arg12[%c0_32, %c0_33] : memref<96x192xf32, #tpu.memory_space<vmem>>, vector<96x192xf32>
    %cst_34 = arith.constant dense<0.000000e+00> : vector<16x192xf32>
    %40 = tpu.matmul %38, %39, %cst_34 {dimension_numbers = #tpu.dot_dimension_numbers<[1], [0], [0], [1], [0, 0, 1, 1], [], []>} : vector<16x96xf32>, vector<96x192xf32>, vector<16x192xf32> -> vector<16x192xf32>
    %c0_35 = arith.constant 0 : index
    %c0_36 = arith.constant 0 : index
    %41 = vector.load %arg13[%c0_35, %c0_36] : memref<1x192xf32, #tpu.memory_space<vmem>>, vector<1x192xf32>
    %42 = vector.broadcast %41 : vector<1x192xf32> to vector<16x192xf32>
    %43 = arith.addf %40, %42 : vector<16x192xf32>
    %cst_37 = arith.constant 0.000000e+00 : f32
    %44 = vector.broadcast %cst_37 : f32 to vector<16x192xf32>
    %45 = arith.maximumf %43, %44 : vector<16x192xf32>
    %c0_38 = arith.constant 0 : index
    %c0_39 = arith.constant 0 : index
    %46 = vector.load %arg14[%c0_38, %c0_39] : memref<192x16xf32, #tpu.memory_space<vmem>>, vector<192x16xf32>
    %cst_40 = arith.constant dense<0.000000e+00> : vector<16x16xf32>
    %47 = tpu.matmul %45, %46, %cst_40 {dimension_numbers = #tpu.dot_dimension_numbers<[1], [0], [0], [1], [0, 0, 1, 1], [], []>} : vector<16x192xf32>, vector<192x16xf32>, vector<16x16xf32> -> vector<16x16xf32>
    %c0_41 = arith.constant 0 : index
    %c0_42 = arith.constant 0 : index
    %48 = vector.load %arg15[%c0_41, %c0_42] : memref<1x16xf32, #tpu.memory_space<vmem>>, vector<1x16xf32>
    %49 = vector.broadcast %48 : vector<1x16xf32> to vector<16x16xf32>
    %50 = arith.addf %47, %49 : vector<16x16xf32>
    %51 = tpu.iota {dimensions = array<i32: 1>} : vector<16x16xi32>
    %c4_i32 = arith.constant 4 : i32
    %52 = vector.broadcast %c4_i32 : i32 to vector<16x16xi32>
    %53 = arith.cmpi eq, %51, %52 : vector<16x16xi32>
    %c5_i32 = arith.constant 5 : i32
    %54 = vector.broadcast %c5_i32 : i32 to vector<16x16xi32>
    %55 = arith.cmpi eq, %51, %54 : vector<16x16xi32>
    %56 = arith.ori %53, %55 : vector<16x16xi1>
    %c8_i32 = arith.constant 8 : i32
    %57 = vector.broadcast %c8_i32 : i32 to vector<16x16xi32>
    %58 = arith.cmpi eq, %51, %57 : vector<16x16xi32>
    %59 = arith.ori %56, %58 : vector<16x16xi1>
    %c9_i32 = arith.constant 9 : i32
    %60 = vector.broadcast %c9_i32 : i32 to vector<16x16xi32>
    %61 = arith.cmpi eq, %51, %60 : vector<16x16xi32>
    %62 = arith.ori %59, %61 : vector<16x16xi1>
    %cst_43 = arith.constant 0.000000e+00 : f32
    %63 = vector.broadcast %cst_43 : f32 to vector<16x16xf32>
    %64 = arith.subf %63, %50 : vector<16x16xf32>
    %65 = math.exp %64 : vector<16x16xf32>
    %cst_44 = arith.constant 1.000000e+00 : f32
    %66 = vector.broadcast %cst_44 : f32 to vector<16x16xf32>
    %67 = arith.addf %66, %65 : vector<16x16xf32>
    %68 = tpu.reciprocal %67 {approx = true} : vector<16x16xf32> -> vector<16x16xf32>
    %69 = arith.mulf %67, %68 : vector<16x16xf32>
    %cst_45 = arith.constant 2.000000e+00 : f32
    %70 = vector.broadcast %cst_45 : f32 to vector<16x16xf32>
    %71 = arith.subf %70, %69 : vector<16x16xf32>
    %72 = arith.mulf %68, %71 : vector<16x16xf32>
    %73 = arith.select %62, %72, %50 : vector<16x16xi1>, vector<16x16xf32>
    %c0_46 = arith.constant 0 : index
    %c0_47 = arith.constant 0 : index
    %74 = vector.load %arg16[%c0_46, %c0_47] : memref<16x16xf32, #tpu.memory_space<vmem>>, vector<16x16xf32>
    tpu.vector_store %arg16[%c0_46, %c0_47], %73 {strides = array<i32>} : memref<16x16xf32, #tpu.memory_space<vmem>>, vector<16x16xf32>,
    return
  }
  func.func @transform_0(%arg0: i32) -> (i32, i32) {
    %c0_i32 = arith.constant 0 : i32
    %c0_i32_0 = arith.constant 0 : i32
    return %arg0, %c0_i32 : i32, i32
  }
  func.func @transform_1(%arg0: i32) -> (i32, i32) {
    %c0_i32 = arith.constant 0 : i32
    %c0_i32_0 = arith.constant 0 : i32
    return %arg0, %c0_i32 : i32, i32
  }
  func.func @transform_2(%arg0: i32) -> (i32, i32) {
    %c0_i32 = arith.constant 0 : i32
    %c0_i32_0 = arith.constant 0 : i32
    return %arg0, %c0_i32 : i32, i32
  }
  func.func @transform_3(%arg0: i32) -> (i32, i32) {
    %c0_i32 = arith.constant 0 : i32
    %c0_i32_0 = arith.constant 0 : i32
    %c0_i32_1 = arith.constant 0 : i32
    return %c0_i32, %c0_i32_0 : i32, i32
  }
  func.func @transform_4(%arg0: i32) -> (i32, i32) {
    %c0_i32 = arith.constant 0 : i32
    %c0_i32_0 = arith.constant 0 : i32
    %c0_i32_1 = arith.constant 0 : i32
    return %c0_i32, %c0_i32_0 : i32, i32
  }
  func.func @transform_5(%arg0: i32) -> (i32, i32) {
    %c0_i32 = arith.constant 0 : i32
    %c0_i32_0 = arith.constant 0 : i32
    %c0_i32_1 = arith.constant 0 : i32
    return %c0_i32, %c0_i32_0 : i32, i32
  }
  func.func @transform_6(%arg0: i32) -> (i32, i32) {
    %c0_i32 = arith.constant 0 : i32
    %c0_i32_0 = arith.constant 0 : i32
    %c0_i32_1 = arith.constant 0 : i32
    return %c0_i32, %c0_i32_0 : i32, i32
  }
  func.func @transform_7(%arg0: i32) -> (i32, i32) {
    %c0_i32 = arith.constant 0 : i32
    %c0_i32_0 = arith.constant 0 : i32
    %c0_i32_1 = arith.constant 0 : i32
    return %c0_i32, %c0_i32_0 : i32, i32
  }
  func.func @transform_8(%arg0: i32) -> (i32, i32) {
    %c0_i32 = arith.constant 0 : i32
    %c0_i32_0 = arith.constant 0 : i32
    %c0_i32_1 = arith.constant 0 : i32
    return %c0_i32, %c0_i32_0 : i32, i32
  }
  func.func @transform_9(%arg0: i32) -> (i32, i32) {
    %c0_i32 = arith.constant 0 : i32
    %c0_i32_0 = arith.constant 0 : i32
    %c0_i32_1 = arith.constant 0 : i32
    return %c0_i32, %c0_i32_0 : i32, i32
  }
  func.func @transform_10(%arg0: i32) -> (i32, i32) {
    %c0_i32 = arith.constant 0 : i32
    %c0_i32_0 = arith.constant 0 : i32
    %c0_i32_1 = arith.constant 0 : i32
    return %c0_i32, %c0_i32_0 : i32, i32
  }
  func.func @transform_11(%arg0: i32) -> (i32, i32) {
    %c0_i32 = arith.constant 0 : i32
    %c0_i32_0 = arith.constant 0 : i32
    %c0_i32_1 = arith.constant 0 : i32
    return %c0_i32, %c0_i32_0 : i32, i32
  }
  func.func @transform_12(%arg0: i32) -> (i32, i32) {
    %c0_i32 = arith.constant 0 : i32
    %c0_i32_0 = arith.constant 0 : i32
    %c0_i32_1 = arith.constant 0 : i32
    return %c0_i32, %c0_i32_0 : i32, i32
  }
  func.func @transform_13(%arg0: i32) -> (i32, i32) {
    %c0_i32 = arith.constant 0 : i32
    %c0_i32_0 = arith.constant 0 : i32
    %c0_i32_1 = arith.constant 0 : i32
    return %c0_i32, %c0_i32_0 : i32, i32
  }
  func.func @transform_14(%arg0: i32) -> (i32, i32) {
    %c0_i32 = arith.constant 0 : i32
    %c0_i32_0 = arith.constant 0 : i32
    %c0_i32_1 = arith.constant 0 : i32
    return %c0_i32, %c0_i32_0 : i32, i32
  }
  func.func @transform_15(%arg0: i32) -> (i32, i32) {
    %c0_i32 = arith.constant 0 : i32
    %c0_i32_0 = arith.constant 0 : i32
    return %arg0, %c0_i32 : i32, i32
  }
}

</mosaic_0001>

<bundles_post_ra>
// kernel: tpu_custom_call.1
= control target key start
LH: loop header
LB: loop body
LE: loop exit
PB: predicated region body
PF: predicated region fallthrough
CT: control target
= control target key end

     0   :  { %20 = vsyncpa [#allocation3], 0  ;;  %s1652_s0 = inlined_call_operand.vmem [shape: f32[16,32], index: 0, kind: input, shape index: {}]   ;;  %s1653_s1 = inlined_call_operand.hbm [shape: f32[16,32], index: 1, kind: input, shape index: {}]   ;;  %s1654_s2 = inlined_call_operand.hbm [shape: f32[16,32], index: 2, kind: input, shape index: {}]   ;;  %s1655_s3 = inlined_call_operand.vmem [shape: f32[32,64], index: 3, kind: input, shape index: {}]   ;;  %s1656_s4 = inlined_call_operand.vmem [shape: f32[32,64], index: 4, kind: input, shape index: {}]   ;;  %s1657_s5 = inlined_call_operand.vmem [shape: f32[1,64], index: 5, kind: input, shape index: {}]   ;;  %s1658_s6 = inlined_call_operand.vmem [shape: f32[64,32], index: 6, kind: input, shape index: {}]   ;;  %s1659_s7 = inlined_call_operand.vmem [shape: f32[1,32], index: 7, kind: input, shape index: {}]   ;;  %s1660_s8 = inlined_call_operand.vmem [shape: f32[32,96], index: 8, kind: input, shape index: {}]   ;;  %s1661_s9 = inlined_call_operand.hbm [shape: f32[32,96], index: 9, kind: input, shape index: {}]   ;;  %s1662_s10 = inlined_call_operand.vmem [shape: f32[1,96], index: 10, kind: input, shape index: {}]   ;;  %s1663_s11 = inlined_call_operand.vmem [shape: f32[96,192], index: 11, kind: input, shape index: {}]   ;;  %s1664_s12 = inlined_call_operand.vmem [shape: f32[1,192], index: 12, kind: input, shape index: {}]   ;;  %s1665_s13 = inlined_call_operand.vmem [shape: f32[192,16], index: 13, kind: input, shape index: {}]   ;;  %s1666_s14 = inlined_call_operand.vmem [shape: f32[1,16], index: 14, kind: input, shape index: {}]   ;;  %s1667_s15 = inlined_call_operand.hbm [shape: f32[16,16], index: 15, kind: output, shape index: {}]  }
   0x1   :  { %21 = vsyncpa [#allocation6], 0 }
   0x2   :  { %22 = vsyncpa [#allocation4], 0  ;;  %s1274_s18 = smov [#allocation5]   ;;  %s1275_s20 = smov [#allocation2]  }
   0x3   :  { %s42_s19 = sshll.u32 %s1274_s18, 4  ;;  %s30_s21 = sshll.u32 %s1275_s20, 4  ;;  %s43_s19 = int_to_ptr.vmem [resolvable:$true] %s42_s19  ;;  %s31_s21 = int_to_ptr.vmem [resolvable:$true] %s30_s21 }
   0x4   :  { %s1196_s22 = scalar_lea.vmem %s43_s19, 256  ;;  %p1201_p1 = scmp.lt.s32.totalorder %s43_s19, %s43_s19 }
   0x5   :  { %p1197_p0 = scmp.ne.s32.totalorder %s43_s19, %s1196_s22  ;;  %p1202_p2 = scmp.lt.s32.totalorder %s1196_s22, %s1196_s22 }
   0x7   :  { %p1203_p3 = por %p1202_p2, %p1201_p1 }
   0x9   :  { %p1204_p4 = pnand %p1203_p3, %p1197_p0 }
   0xb   :  { %1207 = shalt.err (!%p1204_p4)
}
   0xc   :  { %s1276_s23 = smov 128   ;;  %s1277_s24 = smov 8  }
   0xd   :  { %48 = dma.hbm_to_vmem [thread:$0]  %s1654_s2, 256, %s43_s19, [#allocation6], %s1276_s23, %s1276_s23, %s1277_s24  }
   0xe   :  { %s1216_s27 = scalar_lea.vmem %s31_s21, 256  ;;  %p1221_p6 = scmp.lt.s32.totalorder %s31_s21, %s31_s21 }
   0xf   :  { %p1217_p5 = scmp.ne.s32.totalorder %s31_s21, %s1216_s27  ;;  %p1222_p7 = scmp.lt.s32.totalorder %s1216_s27, %s1216_s27 }
  0x11   :  { %p1223_p8 = por %p1222_p7, %p1221_p6 }
  0x13   :  { %p1224_p9 = pnand %p1223_p8, %p1217_p5 }
  0x15   :  { %1227 = shalt.err (!%p1224_p9)
}
  0x16   :  { %36 = dma.hbm_to_vmem [thread:$0]  %s1653_s1, 256, %s31_s21, [#allocation3], %s1276_s23, %s1276_s23, %s1277_s24  }
  0x17   :  { %s1278_s30 = smov [#allocation7]  }
  0x18   :  { %s66_s16 = sshll.u32 %s1278_s30, 4  ;;  %s67_s16 = int_to_ptr.vmem [resolvable:$true] %s66_s16 }
  0x19   :  { %s1236_s17 = scalar_lea.vmem %s67_s16, 512  ;;  %p1241_p11 = scmp.lt.s32.totalorder %s67_s16, %s67_s16 }
  0x1a   :  { %p1237_p10 = scmp.ne.s32.totalorder %s67_s16, %s1236_s17  ;;  %p1242_p12 = scmp.lt.s32.totalorder %s1236_s17, %s1236_s17 }
  0x1c   :  { %p1243_p13 = por %p1242_p12, %p1241_p11 }
  0x1e   :  { %p1244_p0 = pnand %p1243_p13, %p1237_p10 }
  0x20   :  { %1247 = shalt.err (!%p1244_p0)
}
  0x21   :  { %72 = dma.hbm_to_vmem [thread:$0]  %s1661_s9, 512, %s67_s16, [#allocation6], %s1276_s23, %s1276_s23, %s1277_s24  }
  0x22   :  { %1268 = dma.done.wait [#allocation3], 256  }
  0x23   :  { %1269 = vsyncadd [#allocation3], 4294967040 }
  0x24   :  { %1270 = dma.done.wait [#allocation6], 768  }
  0x25   :  { %1271 = vsyncadd [#allocation6], 4294966528  ;;  %v101_v0 = vld [vmem:[%s1656_s4 + $0x18] sm:$0xff]  ;;  %v100_v2 = vld [vmem:[%s1656_s4 + $0x10] sm:$0xff]  ;;  %vm109_vm0 = vcmask 261120   ;;  %vm376_vm1 = vcmask 523264  }
  0x26   :  { %v194_v1 = vld [vmem:[%s1655_s3 + $0x18] sm:$0xff]  ;;  %1080 = vmatprep.subr.mxu0 %v101_v0  ;;  %v193_v3 = vld [vmem:[%s1655_s3 + $0x10] sm:$0xff]  ;;  %v99_v4 = vld [vmem:[%s1656_s4 + $0x8] sm:$0xff]  ;;  %vm760_vm2 = vcmask 785408   ;;  %vm987_vm10 = vcmask 130048  }
  0x27   :  { %1091 = vmatprep.subr.mxu1 %v194_v1  ;;  %1081 = vmatpush3.msra.mxu0 %v101_v0  ;;  %v192_v5 = vld [vmem:[%s1655_s3 + $0x8] sm:$0xff]  ;;  %v98_v6 = vld [vmem:[%s1656_s4] sm:$0xff]  ;;  %v96_v8 = vld [vmem:[#allocation5] sm:$0xff] }
  0x28   :  { %1092 = vmatpush3.msra.mxu1 %v194_v1  ;;  %1082 = vmatprep.subr.mxu0 %v100_v2  ;;  %v191_v7 = vld [vmem:[%s1655_s3] sm:$0xff]  ;;  %v97_v10 = vld [vmem:[#allocation5 + $0x8] sm:$0xff]  ;;  %v93_v11 = vld [vmem:[%s1652_s0 + $0x8] sm:$0xff] }
  0x29   :  { %1093 = vmatprep.subr.mxu1 %v193_v3  ;;  %1083 = vmatpush3.msra.mxu0 %v100_v2  ;;  %v92_v9 = vld [vmem:[%s1652_s0] sm:$0xff]  ;;  %v368_v13 = vld [vmem:[%s1658_s6 + $0x38] sm:$0xff]  ;;  %v367_v14 = vld [vmem:[%s1658_s6 + $0x30] sm:$0xff] }
  0x2a   :  { %1094 = vmatpush3.msra.mxu1 %v193_v3  ;;  %1084 = vmatprep.subr.mxu0 %v99_v4  ;;  %v94_v12 = vld [vmem:[#allocation2] sm:$0xff]  ;;  %v366_v15 = vld [vmem:[%s1658_s6 + $0x28] sm:$0xff]  ;;  %v364_v18 = vld [vmem:[%s1658_s6 + $0x18] sm:$0xff] }
  0x2b   :  { %1095 = vmatprep.subr.mxu1 %v192_v5  ;;  %1085 = vmatpush3.msra.mxu0 %v99_v4  ;;  %v365_v16 = vld [vmem:[%s1658_s6 + $0x20] sm:$0xff]  ;;  %v95_v17 = vld [vmem:[#allocation2 + $0x8] sm:$0xff]  ;;  %v363_v19 = vld [vmem:[%s1658_s6 + $0x10] sm:$0xff] }
  0x2c   :  { %1096 = vmatpush3.msra.mxu1 %v192_v5  ;;  %1086 = vmatprep.subr.mxu0 %v98_v6  ;;  %v362_v20 = vld [vmem:[%s1658_s6 + $0x8] sm:$0xff]  ;;  %v361_v21 = vld [vmem:[%s1658_s6] sm:$0xff]  ;;  %v546_v39 = vld [vmem:[%s1660_s8 + $0x18] sm:$0xff] }
  0x2d   :  { %1097 = vmatprep.subr.mxu1 %v191_v7  ;;  %1087 = vmatpush3.msra.mxu0 %v98_v6  ;;  %v1008_v22 = vld [vmem:[%s1657_s5] ss:$0 sm:$0xff]  ;;  %v545_v40 = vld [vmem:[%s1660_s8 + $0x10] sm:$0xff]  ;;  %v544_v41 = vld [vmem:[%s1660_s8 + $0x8] sm:$0xff] }
  0x2e   :  { %1088 = vmatprep.mubr.msk.f32.mxu0 %vm109_vm0, %v96_v8  ;;  %1098 = vmatpush3.msra.mxu1 %v191_v7  ;;  %v543_v42 = vld [vmem:[%s1660_s8] sm:$0xff]  ;;  %v550_v43 = vld [vmem:[#allocation7 + $0x18] sm:$0xff]  ;;  %v549_v44 = vld [vmem:[#allocation7 + $0x10] sm:$0xff] }
  0x2f   :  { %1099 = vmatprep.mubr.msk.f32.mxu1 %vm109_vm0, %v92_v9  ;;  %1089 = vmatmul.mubr.msk.f32.vlgmr.msra.gmra.mxu0 %vm109_vm0, %v97_v10  ;;  %v548_v45 = vld [vmem:[#allocation7 + $0x8] sm:$0xff]  ;;  %v547_v46 = vld [vmem:[#allocation7] sm:$0xff]  ;;  %v747_v60 = vld [vmem:[%s1663_s11 + $0xb8] sm:$0xff] }
  0x30   :  { %1100 = vmatmul.mubr.msk.f32.vlgmr.msra.gmra.mxu1 %vm109_vm0, %v93_v11  ;;  %1102 = vmatprep.subr.mxu0 %v194_v1  ;;  %v1015_v47 = vld [vmem:[%s1659_s7] ss:$0 sm:$0xff]  ;;  %v746_v61 = vld [vmem:[%s1663_s11 + $0xb0] sm:$0xff]  ;;  %v745_v62 = vld [vmem:[%s1663_s11 + $0xa8] sm:$0xff] }
  0x31   :  { %1110 = vmatprep.mubr.msk.f32.mxu0 %vm109_vm0, %v94_v12  ;;  %1103 = vmatpush3.msra.mxu0 %v194_v1  ;;  %v744_v63 = vld [vmem:[%s1663_s11 + $0xa0] sm:$0xff]  ;;  %v743_v0 = vld [vmem:[%s1663_s11 + $0x98] sm:$0xff]  ;;  %v742_v1 = vld [vmem:[%s1663_s11 + $0x90] sm:$0xff] }
  0x32   :  { %1113 = vmatprep.subr.mxu1 %v368_v13  ;;  %1104 = vmatprep.subr.mxu0 %v193_v3  ;;  %v741_v2 = vld [vmem:[%s1663_s11 + $0x88] sm:$0xff]  ;;  %v739_v4 = vld [vmem:[%s1663_s11 + $0x78] sm:$0xff]  ;;  %v734_v9 = vld [vmem:[%s1663_s11 + $0x50] sm:$0xff] }
  0x33   :  { %1114 = vmatpush3.msra.mxu1 %v368_v13  ;;  %1105 = vmatpush3.msra.mxu0 %v193_v3  ;;  %v740_v3 = vld [vmem:[%s1663_s11 + $0x80] sm:$0xff]  ;;  %v737_v6 = vld [vmem:[%s1663_s11 + $0x68] sm:$0xff]  ;;  %v735_v8 = vld [vmem:[%s1663_s11 + $0x58] sm:$0xff] }
  0x34   :  { %1115 = vmatprep.subr.mxu1 %v367_v14  ;;  %1106 = vmatprep.subr.mxu0 %v192_v5  ;;  %v733_v10 = vld [vmem:[%s1663_s11 + $0x48] sm:$0xff]  ;;  %v732_v11 = vld [vmem:[%s1663_s11 + $0x40] sm:$0xff]  ;;  %v731_v12 = vld [vmem:[%s1663_s11 + $0x38] sm:$0xff] }
  0x35   :  { %1116 = vmatpush3.msra.mxu1 %v367_v14  ;;  %1107 = vmatpush3.msra.mxu0 %v192_v5  ;;  %v738_v5 = vld [vmem:[%s1663_s11 + $0x70] sm:$0xff] }
  0x36   :  { %1117 = vmatprep.subr.mxu1 %v366_v15  ;;  %1108 = vmatprep.subr.mxu0 %v191_v7 }
  0x37   :  { %1118 = vmatpush3.msra.mxu1 %v366_v15  ;;  %1109 = vmatpush3.msra.mxu0 %v191_v7  ;;  %v736_v7 = vld [vmem:[%s1663_s11 + $0x60] sm:$0xff] }
  0x38   :  { %1119 = vmatprep.subr.mxu1 %v365_v16  ;;  %1111 = vmatmul.mubr.msk.f32.vlgmr.msra.gmra.mxu0 %vm109_vm0, %v95_v17  ;;  %v726_v17 = vld [vmem:[%s1663_s11 + $0x10] sm:$0xff] }
  0x39   :  { %1120 = vmatpush3.msra.mxu1 %v365_v16  ;;  %1162 = vmatprep.subr.mxu0 %v546_v39 }
  0x3a   :  { %1121 = vmatprep.subr.mxu1 %v364_v18  ;;  %1163 = vmatpush3.msra.mxu0 %v546_v39  ;;  %v869_v39 = vld [vmem:[%s1665_s13 + $0xa8] sm:$0xff] }
  0x3b   :  { %1122 = vmatpush3.msra.mxu1 %v364_v18  ;;  %1164 = vmatprep.subr.mxu0 %v545_v40 }
  0x3c   :  { %1123 = vmatprep.subr.mxu1 %v363_v19  ;;  %1165 = vmatpush3.msra.mxu0 %v545_v40  ;;  %v868_v40 = vld [vmem:[%s1665_s13 + $0xa0] sm:$0xff] }
  0x3d   :  { %1124 = vmatpush3.msra.mxu1 %v363_v19  ;;  %1166 = vmatprep.subr.mxu0 %v544_v41 }
  0x3e   :  { %1125 = vmatprep.subr.mxu1 %v362_v20  ;;  %1167 = vmatpush3.msra.mxu0 %v544_v41 }
  0x3f   :  { %1126 = vmatpush3.msra.mxu1 %v362_v20  ;;  %1168 = vmatprep.subr.mxu0 %v543_v42 }
  0x40   :  { %1127 = vmatprep.subr.mxu1 %v361_v21  ;;  %1169 = vmatpush3.msra.mxu0 %v543_v42 }
  0x41   :  { %1128 = vmatpush3.msra.mxu1 %v361_v21 }
  0x42   :  { %1132 = vmatprep.subr.mxu1 %v368_v13 }
  0xef   :  { %v1090_v23 = vpop.f32.mrf.mxu0 }
  0xf0   :  { %v1101_v24 = vpop.f32.mrf.mxu1  ;;  %v188_v25 = vadd.f32 %v1090_v23, %v1008_v22  ;;  %v861_v23 = vld [vmem:[%s1665_s13 + $0x68] sm:$0xff] }
  0xf1   :  { %v182_v26 = vpop.f32.mrf.mxu0 }
  0xf2   :  { %v183_v27 = vadd.f32 %v1008_v22, %v182_v26  ;;  %v273_v28 = vadd.f32 %v1101_v24, %v188_v25  ;;  %v267_v29 = vpop.f32.mrf.mxu1  ;;  %v862_v22 = vld [vmem:[%s1665_s13 + $0x70] sm:$0xff]  ;;  %v860_v24 = vld [vmem:[%s1665_s13 + $0x60] sm:$0xff] }
  0xf3   :  { %v858_v26 = vld [vmem:[%s1665_s13 + $0x50] sm:$0xff] }
  0xf4   :  { %v268_v30 = vadd.f32 %v267_v29, %v183_v27  ;;  %v277_v32 = vmax.f32 %v273_v28, 0.0  ;;  %v856_v28 = vld [vmem:[%s1665_s13 + $0x40] sm:$0xff]  ;;  %v855_v29 = vld [vmem:[%s1665_s13 + $0x38] sm:$0xff] }
  0xf6   :  { %v276_v31 = vmax.f32 %v268_v30, 0.0  ;;  %v854_v30 = vld [vmem:[%s1665_s13 + $0x30] sm:$0xff] }
  0xf8   :  { %v1112_v33 = vpop.f32.mrf.mxu0  ;;  %1129 = vmatprep.mubr.msk.f32.mxu1 %vm376_vm1, %v276_v31  ;;  %v853_v31 = vld [vmem:[%s1665_s13 + $0x28] sm:$0xff] }
  0xf9   :  { %1130 = vmatmul.mubr.msk.f32.vlgmr.msra.gmra.mxu1 %vm376_vm1, %v277_v32  ;;  %v356_v37 = vadd.f32 %v1112_v33, %v188_v25  ;;  %v859_v25 = vld [vmem:[%s1665_s13 + $0x58] sm:$0xff]  ;;  %v852_v32 = vld [vmem:[%s1665_s13 + $0x20] sm:$0xff] }
  0xfa   :  { %v350_v34 = vpop.f32.mrf.mxu0  ;;  %1133 = vmatpush3.msra.mxu1 %v368_v13  ;;  %v730_v13 = vld [vmem:[%s1663_s11 + $0x30] sm:$0xff]  ;;  %v851_v33 = vld [vmem:[%s1665_s13 + $0x18] sm:$0xff] }
  0xfb   :  { %v351_v35 = vadd.f32 %v350_v34, %v183_v27  ;;  %1134 = vmatprep.subr.mxu1 %v367_v14  ;;  %v360_v38 = vmax.f32 %v356_v37, 0.0  ;;  %v857_v27 = vld [vmem:[%s1665_s13 + $0x48] sm:$0xff]  ;;  %v850_v34 = vld [vmem:[%s1665_s13 + $0x10] sm:$0xff]  ;;  %v871_v37 = vld [vmem:[%s1665_s13 + $0xb8] sm:$0xff] }
  0xfc   :  { %1135 = vmatpush3.msra.mxu1 %v367_v14  ;;  %v729_v14 = vld [vmem:[%s1663_s11 + $0x28] sm:$0xff] }
  0xfd   :  { %v359_v36 = vmax.f32 %v351_v35, 0.0  ;;  %1136 = vmatprep.subr.mxu1 %v366_v15  ;;  %v849_v35 = vld [vmem:[%s1665_s13 + $0x8] sm:$0xff] }
  0xfe   :  { %1137 = vmatpush3.msra.mxu1 %v366_v15  ;;  %v728_v15 = vld [vmem:[%s1663_s11 + $0x20] sm:$0xff] }
  0xff   :  { %1138 = vmatprep.subr.mxu1 %v365_v16  ;;  %1148 = vmatprep.mubr.msk.f32.mxu1 %vm376_vm1, %v359_v36  ;;  %v848_v36 = vld [vmem:[%s1665_s13] sm:$0xff] }
 0x100   :  { %1139 = vmatpush3.msra.mxu1 %v365_v16  ;;  %v727_v16 = vld [vmem:[%s1663_s11 + $0x18] sm:$0xff] }
 0x101   :  { %1140 = vmatprep.subr.mxu1 %v364_v18 }
 0x102   :  { %1141 = vmatpush3.msra.mxu1 %v364_v18  ;;  %v725_v18 = vld [vmem:[%s1663_s11 + $0x8] sm:$0xff] }
 0x103   :  { %1142 = vmatprep.subr.mxu1 %v363_v19 }
 0x104   :  { %1143 = vmatpush3.msra.mxu1 %v363_v19  ;;  %v724_v19 = vld [vmem:[%s1663_s11] sm:$0xff] }
 0x105   :  { %1144 = vmatprep.subr.mxu1 %v362_v20 }
 0x106   :  { %1145 = vmatpush3.msra.mxu1 %v362_v20  ;;  %v1279_v20 = vmov 0.0  }
 0x107   :  { %1146 = vmatprep.subr.mxu1 %v361_v21  ;;  %885 = vmatprep.subr.mxu0 %v1279_v20 }
 0x108   :  { %1147 = vmatpush3.msra.mxu1 %v361_v21  ;;  %v863_v21 = vld [vmem:[%s1665_s13 + $0x78] sm:$0xff] }
 0x109   :  { %1149 = vmatmul.mubr.msk.f32.vlgmr.msra.gmra.mxu1 %vm376_vm1, %v360_v38  ;;  %1151 = vmatprep.subr.mxu1 %v550_v43  ;;  %v870_v38 = vld [vmem:[%s1665_s13 + $0xb0] sm:$0xff] }
 0x10a   :  { %1152 = vmatpush3.msra.mxu1 %v550_v43 }
 0x10b   :  { %1153 = vmatprep.subr.mxu1 %v549_v44 }
 0x10c   :  { %1154 = vmatpush3.msra.mxu1 %v549_v44 }
 0x10d   :  { %1155 = vmatprep.subr.mxu1 %v548_v45 }
 0x10e   :  { %1156 = vmatpush3.msra.mxu1 %v548_v45 }
 0x10f   :  { %1157 = vmatprep.subr.mxu1 %v547_v46 }
 0x110   :  { %1158 = vmatpush3.msra.mxu1 %v547_v46 }
 0x111   :  { %775 = vmatprep.subr.mxu1 %v747_v60 }
 0x1b9   :  { %v1131_v48 = vpop.f32.mrf.mxu1 }
 0x1ba   :  { %v455_v49 = vadd.f32 %v1131_v48, %v1015_v47 }
 0x1bb   :  { %v449_v50 = vpop.f32.mrf.mxu1 }
 0x1bc   :  { %v450_v51 = vadd.f32 %v1015_v47, %v449_v50  ;;  %v459_v53 = vmax.f32 %v455_v49, 0.0 }
 0x1be   :  { %v458_v52 = vmax.f32 %v450_v51, 0.0 }
 0x1c0   :  { %1170 = vmatprep.mubr.msk.f32.mxu0 %vm109_vm0, %v458_v52  ;;  %v867_v52 = vld [vmem:[%s1665_s13 + $0x98] sm:$0xff] }
 0x1c1   :  { %1171 = vmatmul.mubr.msk.f32.vlgmr.msra.gmra.mxu0 %vm109_vm0, %v459_v53  ;;  %v866_v53 = vld [vmem:[%s1665_s13 + $0x90] sm:$0xff] }
 0x1c2   :  { %886 = vmatpush1.msra.mxu0 %v863_v21 }
 0x1c3   :  { %887 = vmatprep.subr.mxu0 %v1279_v20 }
 0x1c4   :  { %888 = vmatpush1.msra.mxu0 %v862_v22 }
 0x1c5   :  { %889 = vmatprep.subr.mxu0 %v1279_v20 }
 0x1c6   :  { %890 = vmatpush1.msra.mxu0 %v861_v23 }
 0x1c7   :  { %891 = vmatprep.subr.mxu0 %v1279_v20 }
 0x1c8   :  { %892 = vmatpush1.msra.mxu0 %v860_v24 }
 0x1c9   :  { %v1150_v54 = vpop.f32.mrf.mxu1  ;;  %893 = vmatprep.subr.mxu0 %v1279_v20 }
 0x1ca   :  { %v538_v55 = vadd.f32 %v1150_v54, %v1015_v47  ;;  %894 = vmatpush1.msra.mxu0 %v859_v25  ;;  %v865_v54 = vld [vmem:[%s1665_s13 + $0x88] sm:$0xff] }
 0x1cb   :  { %v532_v56 = vpop.f32.mrf.mxu1  ;;  %895 = vmatprep.subr.mxu0 %v1279_v20 }
 0x1cc   :  { %v533_v57 = vadd.f32 %v1015_v47, %v532_v56  ;;  %v542_v59 = vmax.f32 %v538_v55, 0.0  ;;  %896 = vmatpush1.msra.mxu0 %v858_v26  ;;  %v1024_v47 = vld [vmem:[%s1662_s10] ss:$0 sm:$0xff]  ;;  %v750_v56 = vlaneseq }
 0x1cd   :  { %897 = vmatprep.subr.mxu0 %v1279_v20  ;;  %v864_v55 = vld [vmem:[%s1665_s13 + $0x80] sm:$0xff] }
 0x1ce   :  { %v541_v58 = vmax.f32 %v533_v57, 0.0  ;;  %898 = vmatpush1.msra.mxu0 %v857_v27  ;;  %v751_v57 = vshrl.u32 %v750_v56, 7  ;;  %v961_v26 = vand.u32 127, %v750_v56 }
 0x1cf   :  { %899 = vmatprep.subr.mxu0 %v1279_v20 }
 0x1d0   :  { %1159 = vmatprep.mubr.msk.f32.mxu1 %vm109_vm0, %v541_v58  ;;  %900 = vmatpush1.msra.mxu0 %v856_v28  ;;  %v752_v58 = vsub.s32 0, %v751_v57  ;;  %v756_v60 = vsub.s32 1, %v751_v57  ;;  %vm962_vm3 = vcmp.eq.s32.totalorder %v961_v26, 4  ;;  %vm963_vm4 = vcmp.eq.s32.totalorder %v961_v26, 5 }
 0x1d1   :  { %1160 = vmatmul.mubr.msk.f32.vlgmr.msra.gmra.mxu1 %vm109_vm0, %v542_v59  ;;  %901 = vmatprep.subr.mxu0 %v1279_v20  ;;  %v748_v59 = vld [vmem:[%s1664_s12] sm:$0x3]  ;;  %vm964_vm5 = vmor %vm962_vm3, %vm963_vm4  ;;  %vm965_vm6 = vcmp.eq.s32.totalorder %v961_v26, 8  ;;  %vm967_vm8 = vcmp.eq.s32.totalorder %v961_v26, 9 }
 0x1d2   :  { %776 = vmatpush1.msra.mxu1 %v746_v61  ;;  %831 = vmatprep.mubr.f32.mxu1 %v1279_v20  ;;  %v753_v61 = vrot.slane %v748_v59, %v752_v58  ;;  %vm966_vm7 = vmor %vm964_vm5, %vm965_vm6 }
 0x1d3   :  { %777 = vmatprep.subr.mxu1 %v745_v62  ;;  %902 = vmatpush1.msra.mxu0 %v855_v29  ;;  %v757_v62 = vrot.slane %v748_v59, %v756_v60  ;;  %vm968_vm9 = vmor %vm966_vm7, %vm967_vm8 }
 0x1d4   :  { %778 = vmatpush1.msra.mxu1 %v744_v63  ;;  %903 = vmatprep.subr.mxu0 %v1279_v20 }
 0x1d5   :  { %779 = vmatprep.subr.mxu1 %v743_v0  ;;  %904 = vmatpush1.msra.mxu0 %v854_v30 }
 0x1d6   :  { %780 = vmatpush1.msra.mxu1 %v742_v1  ;;  %905 = vmatprep.subr.mxu0 %v1279_v20 }
 0x1d7   :  { %781 = vmatprep.subr.mxu1 %v741_v2  ;;  %906 = vmatpush1.msra.mxu0 %v853_v31 }
 0x1d8   :  { %782 = vmatpush1.msra.mxu1 %v740_v3  ;;  %907 = vmatprep.subr.mxu0 %v1279_v20 }
 0x1d9   :  { %783 = vmatprep.subr.mxu1 %v739_v4  ;;  %908 = vmatpush1.msra.mxu0 %v852_v32 }
 0x1da   :  { %784 = vmatpush1.msra.mxu1 %v738_v5  ;;  %909 = vmatprep.subr.mxu0 %v1279_v20 }
 0x1db   :  { %785 = vmatprep.subr.mxu1 %v737_v6  ;;  %910 = vmatpush1.msra.mxu0 %v851_v33 }
 0x1dc   :  { %786 = vmatpush1.msra.mxu1 %v736_v7  ;;  %911 = vmatprep.subr.mxu0 %v1279_v20 }
 0x1dd   :  { %787 = vmatprep.subr.mxu1 %v735_v8  ;;  %912 = vmatpush1.msra.mxu0 %v850_v34 }
 0x1de   :  { %788 = vmatpush1.msra.mxu1 %v734_v9  ;;  %913 = vmatprep.subr.mxu0 %v1279_v20 }
 0x1df   :  { %789 = vmatprep.subr.mxu1 %v733_v10  ;;  %914 = vmatpush1.msra.mxu0 %v849_v35 }
 0x1e0   :  { %790 = vmatpush1.msra.mxu1 %v732_v11  ;;  %915 = vmatprep.subr.mxu0 %v1279_v20  ;;  %v1027_v11 = vld [vmem:[%s1666_s14] ss:$0 sm:$0xff]  ;;  %s1280_s14 = smov [#allocation8]  }
 0x1e1   :  { %791 = vmatprep.subr.mxu1 %v731_v12  ;;  %916 = vmatpush1.msra.mxu0 %v848_v36  ;;  %s995_s30 = sshll.u32 %s1280_s14, 4  ;;  %s996_s30 = int_to_ptr.vmem [resolvable:$true] %s995_s30 }
 0x1e2   :  { %792 = vmatpush1.msra.mxu1 %v730_v13  ;;  %933 = vmatprep.subr.mxu0 %v1279_v20  ;;  %s1248_s16 = scalar_lea.vmem %s996_s30, 256  ;;  %p1253_p2 = scmp.lt.s32.totalorder %s996_s30, %s996_s30 }
 0x1e3   :  { %793 = vmatprep.subr.mxu1 %v729_v14  ;;  %934 = vmatpush2.msra.mxu0 %v871_v37  ;;  %p1249_p1 = scmp.ne.s32.totalorder %s996_s30, %s1248_s16  ;;  %p1254_p3 = scmp.lt.s32.totalorder %s1248_s16, %s1248_s16 }
 0x1e4   :  { %794 = vmatpush1.msra.mxu1 %v728_v15  ;;  %935 = vmatprep.subr.mxu0 %v1279_v20 }
 0x1e5   :  { %795 = vmatprep.subr.mxu1 %v727_v16  ;;  %936 = vmatpush2.msra.mxu0 %v870_v38  ;;  %p1255_p4 = por %p1254_p3, %p1253_p2 }
 0x1e6   :  { %796 = vmatpush1.msra.mxu1 %v726_v17  ;;  %937 = vmatprep.subr.mxu0 %v1279_v20 }
 0x1e7   :  { %797 = vmatprep.subr.mxu1 %v725_v18  ;;  %938 = vmatpush2.msra.mxu0 %v869_v39  ;;  %p1256_p5 = pnand %p1255_p4, %p1249_p1 }
 0x1e8   :  { %798 = vmatpush1.msra.mxu1 %v724_v19  ;;  %939 = vmatprep.subr.mxu0 %v1279_v20 }
 0x1e9   :  { %940 = vmatpush2.msra.mxu0 %v868_v40 }
 0x1ea   :  { %941 = vmatprep.subr.mxu0 %v1279_v20 }
 0x1eb   :  { %942 = vmatpush2.msra.mxu0 %v867_v52 }
 0x1ec   :  { %943 = vmatprep.subr.mxu0 %v1279_v20 }
 0x1ed   :  { %944 = vmatpush2.msra.mxu0 %v866_v53 }
 0x1ee   :  { %945 = vmatprep.subr.mxu0 %v1279_v20 }
 0x1ef   :  { %946 = vmatpush2.msra.mxu0 %v865_v54 }
 0x1f0   :  { %947 = vmatprep.subr.mxu0 %v1279_v20 }
 0x1f1   :  { %948 = vmatpush2.msra.mxu0 %v864_v55 }
 0x281   :  { %v1172_v41 = vpop.f32.mrf.mxu0 }
 0x283   :  { %v704_v43 = vpop.f32.mrf.mxu0 }
 0x291   :  { %v1161_v42 = vpop.f32.mrf.mxu1 }
 0x292   :  { %v710_v45 = vadd.f32 %v1172_v41, %v1161_v42 }
 0x293   :  { %v623_v44 = vpop.f32.mrf.mxu1 }
 0x294   :  { %v705_v46 = vadd.f32 %v704_v43, %v623_v44  ;;  %v721_v49 = vadd.f32 %v1024_v47, %v710_v45 }
 0x296   :  { %v720_v48 = vadd.f32 %v1024_v47, %v705_v46  ;;  %v723_v51 = vmax.f32 %v721_v49, 0.0 }
 0x298   :  { %v722_v50 = vmax.f32 %v720_v48, 0.0 }
 0x29a   :  { %1025 = vmatmul.mubr.msk.f32.vlgmr.msra.gmra.mxu1 %vm760_vm2, %v722_v50 }
 0x29b   :  { %837 = vmatprep.mubr.f32.mxu1 %v1279_v20 }
 0x29e   :  { %1026 = vmatmul.mubr.msk.f32.gmra.mxu1 %vm760_vm2, %v723_v51 }
 0x35a   :  { %v833_v63 = vpop.f32.mrf.mxu1 }
 0x35b   :  { %v834_v0 = vadd.f32 %v833_v63, %v753_v61 }
 0x35c   :  { %v835_v1 = vpop.f32.mrf.mxu1 }
 0x35d   :  { %v836_v2 = vadd.f32 %v835_v1, %v757_v62  ;;  %v844_v5 = vmax.f32 %v834_v0, 0.0 }
 0x35e   :  { %v839_v3 = vpop.f32.mrf.mxu1 }
 0x35f   :  { %v845_v4 = vmax.f32 %v836_v2, 0.0  ;;  %v840_v6 = vadd.f32 %v839_v3, %v753_v61 }
 0x360   :  { %v841_v7 = vpop.f32.mrf.mxu1 }
 0x361   :  { %v842_v8 = vadd.f32 %v841_v7, %v757_v62  ;;  %1028 = vmatprep.mubr.msk.f32.mxu0 %vm376_vm1, %v845_v4  ;;  %v846_v10 = vmax.f32 %v840_v6, 0.0 }
 0x362   :  { %950 = vmatmul.mubr.f32.vlgmr.msra.gmra.mxu0 %v844_v5 }
 0x363   :  { %v847_v9 = vmax.f32 %v842_v8, 0.0 }
 0x365   :  { %1029 = vmatprep.mubr.msk.f32.mxu0 %vm376_vm1, %v847_v9 }
 0x366   :  { %955 = vmatmul.mubr.f32.gmra.mxu0 %v846_v10 }
 0x422   :  { %v951_v12 = vpop.f32.mrf.mxu0 }
 0x423   :  { %v952_v13 = vadd.f32 %v1027_v11, %v951_v12 }
 0x424   :  { %v953_v14 = vpop.f32.mrf.mxu0 }
 0x425   :  { %v969_v15 = vsub.f32 0.0, %v952_v13 }
 0x426   :  { %v956_v16 = vpop.f32.mrf.mxu0 }
 0x427   :  { %v971_v17 = vmul.f32 1.442695, %v969_v15  ;;  %v957_v18 = vadd.f32 %v1027_v11, %v956_v16 }
 0x428   :  { %v958_v19 = vpop.f32.mrf.mxu0 }
 0x429   :  { %1180 = vpow2.f32 %v971_v17  ;;  %v970_v20 = vsub.f32 0.0, %v957_v18 }
 0x42b   :  { %v973_v21 = vmul.f32 1.442695, %v970_v20 }
 0x42d   :  { %1182 = vpow2.f32 %v973_v21 }
 0x436   :  { %v1181_v22 = vpop.eup %1180 }
 0x437   :  { %v975_v23 = vadd.f32 1.0, %v1181_v22 }
 0x439   :  { %1184 = vrcp.f32 %v975_v23 }
 0x43a   :  { %v1183_v24 = vpop.eup %1182 }
 0x43b   :  { %v976_v25 = vadd.f32 1.0, %v1183_v24 }
 0x43d   :  { %1186 = vrcp.f32 %v976_v25 }
 0x446   :  { %v1185_v27 = vpop.eup %1184 }
 0x447   :  { %v979_v28 = vmul.f32 %v1185_v27, %v975_v23 }
 0x449   :  { %v981_v29 = vsub.f32 2.0, %v979_v28 }
 0x44a   :  { %v1187_v30 = vpop.eup %1186 }
 0x44b   :  { %v983_v31 = vmul.f32 %v1185_v27, %v981_v29  ;;  %v980_v32 = vmul.f32 %v1187_v30, %v976_v25 }
 0x44d   :  { %v985_v33 = vsel %vm968_vm9, %v983_v31, %v952_v13  ;;  %v982_v34 = vsub.f32 2.0, %v980_v32 }
 0x44e   :  { %988 = vst.msk [vmem:[#allocation8] sm:$0xff] %vm987_vm10, %v985_v33 }
 0x44f   :  { %v984_v35 = vmul.f32 %v1187_v30, %v982_v34 }
 0x451   :  { %v986_v36 = vsel %vm968_vm9, %v984_v35, %v957_v18 }
 0x452   :  { %989 = vst.msk [vmem:[#allocation8 + $0x8] sm:$0xff] %vm987_vm10, %v986_v36 }
 0x453   :  { %1259 = shalt.err (!%p1256_p5)
}
 0x454   :  { %1001 = dma.vmem_to_hbm [thread:$0]  %s996_s30, 256, %s1667_s15, [#allocation4], %s1276_s23, %s1276_s23, %s1277_s24  }
 0x455   :  { %1272 = dma.done.wait [#allocation4], 256  }
 0x456   :  { %1273 = vsyncadd [#allocation4], 4294967040 }
 0x457   :  { %1005 = vsyncpa [#allocation3], 1 }
 0x458   :  { %1006 = vsyncpa [#allocation6], 1 }
 0x459   :  { %1007 = vsyncpa [#allocation4], 1 }

</bundles_post_ra>
